<compile_context>
chip_gen: v5e
topology: v5e:2x2
jax: 0.10.0
libtpu: 0.0.40
codegen_flags: <defaults>
</compile_context>

<pallas_src>
import jax
import jax.numpy as jnp
from jax import lax
from jax.experimental import pallas as pl
from jax.experimental.pallas import tpu as pltpu

_LANES = 128
_TM_CAP = 512                        # row-tile cap (multiple of every sublane packing)
_MIN_GRID_STEPS = 8                  # target steps for pipelining + v7x megacore
_MIN_TILE_BYTES = 2 * 1024 * 1024    # don't shrink per-input tiles below this
_UNROLL_STATIC = 8                   # static-unroll threshold for the chunk loop


def _round_up(x: int, m: int) -> int:
    return ((x + m - 1) // m) * m


def _cdiv(a: int, b: int) -> int:
    return -(-a // b)


def _vmem_caps():
    """Per-TPU-generation (per-input tile cap bytes, vmem_limit_bytes)."""
    try:
        vmem = int(pltpu.get_tpu_info().vmem_capacity_bytes)
    except Exception:
        vmem = 64 * 1024 * 1024                      # conservative (v7x-sized) fallback
    if vmem >= 100 * 1024 * 1024:                    # v5e / v6e: 128 MiB physical VMEM
        return 12 * 1024 * 1024, 80 * 1024 * 1024
    return 7 * 1024 * 1024, 44 * 1024 * 1024         # v7x: 64 MiB per TensorCore


def _make_masked_rmse_kernel(tm: int, tn: int, hw: int, n_col_blocks: int):
    """Kernel over one (tm, tn) tile of pred/gt (block (i, j) of the 2-D grid).

    Outputs (both (tm, 128) lane-dense, one disjoint block per grid step):
      sq_ref  : per-row, per-lane partial sums of (mask*pred - gt)^2
      cnt_ref : per-row, per-lane partial counts of (gt != 0)
    """
    n_chunks = tn // _LANES
    last_cols = hw - (n_col_blocks - 1) * tn        # valid cols in the LAST col block
    full_last = last_cols // _LANES                 # fully-valid chunks in last block
    ragged = last_cols - full_last * _LANES         # valid lanes in its partial chunk
    has_ragged_block = last_cols != tn              # static: any edge handling needed?

    def chunk_stats(gt_c, pred_c):
        gt = gt_c.astype(jnp.float32)
        pred = pred_c.astype(jnp.float32)
        mask = (gt != 0.0).astype(jnp.float32)
        err = mask * pred - gt                      # exact torch expr (keeps 0*NaN -> NaN)
        return err * err, mask

    def accumulate(pred_ref, gt_ref, n):
        """Sum chunk stats over 128-lane chunks [0, n); n is a Python int."""
        zeros = jnp.zeros((tm, _LANES), jnp.float32)
        if n == 0:
            return zeros, zeros
        if n <= _UNROLL_STATIC:
            sq_acc, cnt_acc = zeros, zeros
            for k in range(n):                      # static, tile-aligned slices
                sq, cnt = chunk_stats(gt_ref[:, pl.ds(k * _LANES, _LANES)],
                                      pred_ref[:, pl.ds(k * _LANES, _LANES)])
                sq_acc, cnt_acc = sq_acc + sq, cnt_acc + cnt
            return sq_acc, cnt_acc

        def body(k, carry):
            sq_a, cnt_a = carry
            off = pl.multiple_of(k * _LANES, _LANES)
            sq, cnt = chunk_stats(gt_ref[:, pl.ds(off, _LANES)],
                                  pred_ref[:, pl.ds(off, _LANES)])
            return sq_a + sq, cnt_a + cnt

        return lax.fori_loop(0, n, body, (zeros, zeros), unroll=4)

    if not has_ragged_block:
        # Common case (H*W a multiple of the lane tile): no edge handling at all.
        def kernel(pred_ref, gt_ref, sq_ref, cnt_ref):
            sq_acc, cnt_acc = accumulate(pred_ref, gt_ref, n_chunks)
            sq_ref[...] = sq_acc
            cnt_ref[...] = cnt_acc
        return kernel

    def kernel(pred_ref, gt_ref, sq_ref, cnt_ref):
        is_last = pl.program_id(1) == pl.num_programs(1) - 1

        @pl.when(jnp.logical_not(is_last))
        def _():
            # Interior column blocks: fully valid, zero masking overhead.
            sq_acc, cnt_acc = accumulate(pred_ref, gt_ref, n_chunks)
            sq_ref[...] = sq_acc
            cnt_ref[...] = cnt_acc

        @pl.when(is_last)
        def _():
            # Last column block: only `full_last` full chunks are valid; the
            # (optional) partial chunk gets a static lane mask.  jnp.where (not
            # multiply) so garbage/NaN beyond H*W cannot leak in.
            sq_acc, cnt_acc = accumulate(pred_ref, gt_ref, full_last)
            if ragged:
                lane_ok = lax.broadcasted_iota(jnp.int32, (tm, _LANES), 1) < ragged
                off = full_last * _LANES
                gt = jnp.where(lane_ok, gt_ref[:, pl.ds(off, _LANES)].astype(jnp.float32), 0.0)
                pred = jnp.where(lane_ok, pred_ref[:, pl.ds(off, _LANES)].astype(jnp.float32), 0.0)
                mask = (gt != 0.0).astype(jnp.float32)
                err = mask * pred - gt
                sq_acc = sq_acc + err * err
                cnt_acc = cnt_acc + mask
            sq_ref[...] = sq_acc
            cnt_ref[...] = cnt_acc

    return kernel


def masked_rmse(pred: jax.Array, gt: jax.Array) -> jax.Array:
    """pred, gt: (B, C, H, W) float arrays. Returns a scalar float32."""
    assert pred.shape == gt.shape and pred.ndim == 4
    B, C, H, W = pred.shape
    BC, HW = B * C, H * W

    # Flatten to (BC, HW); keep incoming dtype (bf16 is transported as bf16).
    pred2 = pred.reshape(BC, HW)
    gt2 = gt.reshape(BC, HW)

    itemsize = max(jnp.dtype(pred2.dtype).itemsize, jnp.dtype(gt2.dtype).itemsize)
    align = max(8, 32 // itemsize)                  # sublane packing: 8 f32 / 16 bf16 / 32 i8
    tile_cap, vmem_limit = _vmem_caps()

    HWp = _round_up(HW, _LANES)
    bc_al = _round_up(BC, align)

    # Row tile: as many rows as fit the tile budget at the full lane extent,
    # aligned to the sublane packing, clamped to [align, min(BC_aligned, cap)].
    rows_fit = (tile_cap // (HWp * itemsize)) // align * align
    tm = max(align, min(bc_al, _TM_CAP, rows_fit))

    # Lane tile: biggest multiple of 128 that keeps one input tile under the
    # per-generation cap.
    tn_cap = max(_LANES, (tile_cap // (tm * itemsize)) // _LANES * _LANES)
    tn = min(HWp, tn_cap)

    n_i = _cdiv(BC, tm)
    n_j = _cdiv(HW, tn)
    # Ensure enough grid steps for DMA/compute overlap and megacore, without
    # shrinking tiles below ~1-2 MiB (per-step overhead would dominate).
    while (n_i * n_j < _MIN_GRID_STEPS and tn > _LANES
           and tm * tn * itemsize > _MIN_TILE_BYTES):
        tn = max(_LANES, (tn // 2) // _LANES * _LANES)
        n_j = _cdiv(HW, tn)

    kernel = _make_masked_rmse_kernel(tm, tn, HW, n_j)

    # Output rows padded to whole row blocks (fresh allocation, no copy); the
    # epilogue slices back to BC, discarding any garbage-row partials.
    BCo = n_i * tm
    out_cols = n_j * _LANES

    sq_part, cnt_part = pl.pallas_call(
        kernel,
        out_shape=(
            jax.ShapeDtypeStruct((BCo, out_cols), jnp.float32),  # squared-error partials
            jax.ShapeDtypeStruct((BCo, out_cols), jnp.float32),  # valid-count partials
        ),
        grid_spec=pltpu.PrefetchScalarGridSpec(
            num_scalar_prefetch=0,
            grid=(n_i, n_j),
            in_specs=[
                pl.BlockSpec((tm, tn), lambda i, j: (i, j)),
                pl.BlockSpec((tm, tn), lambda i, j: (i, j)),
            ],
            out_specs=[
                pl.BlockSpec((tm, _LANES), lambda i, j: (i, j)),
                pl.BlockSpec((tm, _LANES), lambda i, j: (i, j)),
            ],
        ),
        compiler_params=pltpu.CompilerParams(
            dimension_semantics=("parallel", "parallel"),  # disjoint outputs -> megacore OK
            vmem_limit_bytes=vmem_limit,
        ),
    )(pred2, gt2)

    # Tiny epilogue in plain JAX: lane reduce, global count, sqrt/divide/mean.
    sq_rows = jnp.sum(sq_part[:BC], axis=-1)                 # per-(b,c) squared-error sums
    # int32 count is exact up to 2^31 elements (f32 would bias beyond ~16.7M points).
    valid_points = jnp.sum(cnt_part[:BC].astype(jnp.int32)).astype(jnp.float32)
    return jnp.mean(jnp.sqrt(sq_rows / valid_points))


def _reference(pred, gt):
    mask = jnp.where(gt != 0, 1.0, 0.0)
    valid_points = mask.sum()
    return jnp.sqrt(((mask * pred - gt) ** 2).sum((2, 3)) / valid_points).mean()


if __name__ == "__main__":
    key = jax.random.PRNGKey(0)
    k1, k2, k3 = jax.random.split(key, 3)

    B, C, H, W = 2, 4, 16, 16
    pred = jax.random.normal(k1, (B, C, H, W), dtype=jnp.float32)
    gt = jax.random.normal(k2, (B, C, H, W), dtype=jnp.float32)
    # Make the mask non-trivial: zero out ~30% of gt so `gt != 0` matters.
    drop = jax.random.uniform(k3, (B, C, H, W)) < 0.3
    gt = jnp.where(drop, 0.0, gt)

    out = masked_rmse(pred, gt)
    jax.block_until_ready(out)
    ref = _reference(pred, gt)
    assert jnp.allclose(out, ref, rtol=1e-5, atol=1e-5), (out, ref)

    # Ragged shape: BC not a multiple of the row tile, H*W not a multiple of
    # 128 — exercises the in-kernel edge masking that replaced wrapper pads.
    k4, k5, k6 = jax.random.split(k3, 3)
    pred_r = jax.random.normal(k4, (1, 3, 10, 10), dtype=jnp.float32)
    gt_r = jax.random.normal(k5, (1, 3, 10, 10), dtype=jnp.float32)
    gt_r = jnp.where(jax.random.uniform(k6, (1, 3, 10, 10)) < 0.3, 0.0, gt_r)
    out_r = masked_rmse(pred_r, gt_r)
    jax.block_until_ready(out_r)
    ref_r = _reference(pred_r, gt_r)
    assert jnp.allclose(out_r, ref_r, rtol=1e-5, atol=1e-5), (out_r, ref_r)

    print("KERNEL_OK")
</pallas_src>

<mosaic_0001>
module attributes {stable_mosaic.version = 11 : i64} {
  func.func @kernel(%arg0: i32, %arg1: i32, %arg2: memref<8x256xf32, #tpu.memory_space<vmem>>, %arg3: memref<8x256xf32, #tpu.memory_space<vmem>>, %arg4: memref<8x128xf32, #tpu.memory_space<vmem>>, %arg5: memref<8x128xf32, #tpu.memory_space<vmem>>) attributes {dimension_semantics = [#tpu.dimension_semantics<parallel>, #tpu.dimension_semantics<parallel>], iteration_bounds = array<i64: 1, 1>, scalar_prefetch = 0 : i64, scratch_operands = 0 : i64, tpu.core_type = #tpu.core_type<tc>, window_params = [{transform_indices = @transform_0, window_bounds = array<i64: 8, 256>}, {transform_indices = @transform_1, window_bounds = array<i64: 8, 256>}, {transform_indices = @transform_2, window_bounds = array<i64: 8, 128>}, {transform_indices = @transform_3, window_bounds = array<i64: 8, 128>}]} {
    %cst = arith.constant 0.000000e+00 : f32
    %0 = vector.broadcast %cst : f32 to vector<8x128xf32>
    %c0 = arith.constant 0 : index
    %c0_0 = arith.constant 0 : index
    %1 = vector.load %arg3[%c0, %c0_0] : memref<8x256xf32, #tpu.memory_space<vmem>>, vector<8x128xf32>
    %c0_1 = arith.constant 0 : index
    %c0_2 = arith.constant 0 : index
    %2 = vector.load %arg2[%c0_1, %c0_2] : memref<8x256xf32, #tpu.memory_space<vmem>>, vector<8x128xf32>
    %cst_3 = arith.constant 0.000000e+00 : f32
    %3 = vector.broadcast %cst_3 : f32 to vector<8x128xf32>
    %4 = arith.cmpf one, %1, %3 : vector<8x128xf32>
    %5 = arith.extui %4 : vector<8x128xi1> to vector<8x128xi32>
    %6 = arith.sitofp %5 : vector<8x128xi32> to vector<8x128xf32>
    %7 = arith.mulf %6, %2 : vector<8x128xf32>
    %8 = arith.subf %7, %1 : vector<8x128xf32>
    %9 = arith.mulf %8, %8 : vector<8x128xf32>
    %10 = arith.addf %0, %9 : vector<8x128xf32>
    %11 = arith.addf %0, %6 : vector<8x128xf32>
    %c0_4 = arith.constant 0 : index
    %c128 = arith.constant 128 : index
    %12 = vector.load %arg3[%c0_4, %c128] : memref<8x256xf32, #tpu.memory_space<vmem>>, vector<8x128xf32>
    %c0_5 = arith.constant 0 : index
    %c128_6 = arith.constant 128 : index
    %13 = vector.load %arg2[%c0_5, %c128_6] : memref<8x256xf32, #tpu.memory_space<vmem>>, vector<8x128xf32>
    %cst_7 = arith.constant 0.000000e+00 : f32
    %14 = vector.broadcast %cst_7 : f32 to vector<8x128xf32>
    %15 = arith.cmpf one, %12, %14 : vector<8x128xf32>
    %16 = arith.extui %15 : vector<8x128xi1> to vector<8x128xi32>
    %17 = arith.sitofp %16 : vector<8x128xi32> to vector<8x128xf32>
    %18 = arith.mulf %17, %13 : vector<8x128xf32>
    %19 = arith.subf %18, %12 : vector<8x128xf32>
    %20 = arith.mulf %19, %19 : vector<8x128xf32>
    %21 = arith.addf %10, %20 : vector<8x128xf32>
    %22 = arith.addf %11, %17 : vector<8x128xf32>
    %c0_8 = arith.constant 0 : index
    %c0_9 = arith.constant 0 : index
    %23 = vector.load %arg4[%c0_8, %c0_9] : memref<8x128xf32, #tpu.memory_space<vmem>>, vector<8x128xf32>
    tpu.vector_store %arg4[%c0_8, %c0_9], %21 {strides = array<i32>} : memref<8x128xf32, #tpu.memory_space<vmem>>, vector<8x128xf32>,
    %c0_10 = arith.constant 0 : index
    %c0_11 = arith.constant 0 : index
    %24 = vector.load %arg5[%c0_10, %c0_11] : memref<8x128xf32, #tpu.memory_space<vmem>>, vector<8x128xf32>
    tpu.vector_store %arg5[%c0_10, %c0_11], %22 {strides = array<i32>} : memref<8x128xf32, #tpu.memory_space<vmem>>, vector<8x128xf32>,
    return
  }
  func.func @transform_0(%arg0: i32, %arg1: i32) -> (i32, i32) {
    %c0_i32 = arith.constant 0 : i32
    return %arg0, %arg1 : i32, i32
  }
  func.func @transform_1(%arg0: i32, %arg1: i32) -> (i32, i32) {
    %c0_i32 = arith.constant 0 : i32
    return %arg0, %arg1 : i32, i32
  }
  func.func @transform_2(%arg0: i32, %arg1: i32) -> (i32, i32) {
    %c0_i32 = arith.constant 0 : i32
    return %arg0, %arg1 : i32, i32
  }
  func.func @transform_3(%arg0: i32, %arg1: i32) -> (i32, i32) {
    %c0_i32 = arith.constant 0 : i32
    return %arg0, %arg1 : i32, i32
  }
}

</mosaic_0001>

<bundles_post_ra>
// kernel: tpu_custom_call.1
= control target key start
LH: loop header
LB: loop body
LE: loop exit
PB: predicated region body
PF: predicated region fallthrough
CT: control target
= control target key end

     0   :  { %9 = vsyncpa [#allocation3], 0  ;;  %s247_s0 = inlined_call_operand.hbm [shape: f32[8,256], index: 0, kind: input, shape index: {}]   ;;  %s248_s1 = inlined_call_operand.hbm [shape: f32[8,256], index: 1, kind: input, shape index: {}]   ;;  %s249_s2 = inlined_call_operand.hbm [shape: f32[8,128], index: 2, kind: output, shape index: {0}]   ;;  %s250_s3 = inlined_call_operand.hbm [shape: f32[8,128], index: 3, kind: output, shape index: {1}]  }
   0x1   :  { %10 = vsyncpa [#allocation6], 0 }
   0x2   :  { %11 = vsyncpa [#allocation4], 0 }
   0x3   :  { %12 = vsyncpa [#allocation9], 0  ;;  %s18_s14 = sshll.u32 %s247_s0, 4  ;;  %s210_s15 = smov [#allocation2]   ;;  %s19_s14 = int_to_ptr.hbm [resolvable:$true] %s18_s14 }
   0x4   :  { %s20_s16 = sshll.u32 %s210_s15, 4  ;;  %s29_s19 = sshll.u32 %s248_s1, 4  ;;  %s21_s16 = int_to_ptr.vmem [resolvable:$true] %s20_s16  ;;  %s30_s19 = int_to_ptr.hbm [resolvable:$true] %s29_s19 }
   0x5   :  { %23 = dma.hbm_to_vmem [thread:$0]  %s19_s14, 256, %s21_s16, [#allocation3]  }
   0x6   :  { %s211_s20 = smov [#allocation5]  }
   0x7   :  { %s31_s21 = sshll.u32 %s211_s20, 4  ;;  %s32_s21 = int_to_ptr.vmem [resolvable:$true] %s31_s21 }
   0x8   :  { %34 = dma.hbm_to_vmem [thread:$0]  %s30_s19, 256, %s32_s21, [#allocation6]  }
   0x9   :  { %202 = dma.done.wait [#allocation3], 256  }
   0xa   :  { %203 = vsyncadd [#allocation3], 4294967040 }
   0xb   :  { %204 = dma.done.wait [#allocation6], 256  }
   0xc   :  { %205 = vsyncadd [#allocation6], 4294967040  ;;  %v43_v0 = vld [vmem:[#allocation5] sm:$0xff]  ;;  %v44_v1 = vld [vmem:[#allocation2] sm:$0xff]  ;;  %s212_s0 = smov [#allocation8]   ;;  %s83_s25 = sshll.u32 %s250_s3, 4  ;;  %s84_s25 = int_to_ptr.hbm [resolvable:$true] %s83_s25 }
   0xd   :  { %v53_v2 = vld [vmem:[#allocation5 + $0x8] sm:$0xff]  ;;  %s81_s22 = sshll.u32 %s212_s0, 4  ;;  %vm45_vm0 = vcmp.ne.f32.partialorder %v43_v0, 0.0  ;;  %v54_v3 = vld [vmem:[#allocation2 + $0x8] sm:$0xff]  ;;  %v213_v4 = vmov 0.0   ;;  %s214_s1 = smov [#allocation7]   ;;  %s82_s22 = int_to_ptr.vmem [resolvable:$true] %s81_s22 }
   0xe   :  { %vm55_vm1 = vcmp.ne.f32.partialorder %v53_v2, 0.0  ;;  %v99_v5 = vsel %vm45_vm0, 1.0, %v213_v4  ;;  %s70_s26 = sshll.u32 %s214_s1, 4  ;;  %s72_s3 = sshll.u32 %s249_s2, 4  ;;  %s71_s26 = int_to_ptr.vmem [resolvable:$true] %s70_s26  ;;  %s73_s3 = int_to_ptr.hbm [resolvable:$true] %s72_s3 }
   0xf   :  { %v100_v6 = vsel %vm55_vm1, 1.0, %v213_v4  ;;  %v48_v7 = vmul.f32 %v99_v5, %v44_v1 }
  0x10   :  { %v58_v8 = vmul.f32 %v100_v6, %v54_v3  ;;  %v62_v9 = vadd.f32 %v100_v6, %v99_v5 }
  0x11   :  { %v49_v10 = vsub.f32 %v48_v7, %v43_v0 }
  0x12   :  { %v59_v11 = vsub.f32 %v58_v8, %v53_v2  ;;  %64 = vst [vmem:[#allocation8] sm:$0xff] %v62_v9 }
  0x13   :  { %86 = dma.vmem_to_hbm [thread:$0]  %s82_s22, 128, %s84_s25, [#allocation9]   ;;  %v50_v12 = vmul.f32 %v49_v10, %v49_v10 }
  0x14   :  { %v60_v13 = vmul.f32 %v59_v11, %v59_v11 }
  0x16   :  { %v61_v14 = vadd.f32 %v60_v13, %v50_v12 }
  0x18   :  { %63 = vst [vmem:[#allocation7] sm:$0xff] %v61_v14 }
  0x19   :  { %75 = dma.vmem_to_hbm [thread:$0]  %s71_s26, 128, %s73_s3, [#allocation4]  }
  0x1a   :  { %206 = dma.done.wait [#allocation4], 128  }
  0x1b   :  { %207 = vsyncadd [#allocation4], 4294967168 }
  0x1c   :  { %208 = dma.done.wait [#allocation9], 128  }
  0x1d   :  { %209 = vsyncadd [#allocation9], 4294967168 }
  0x1e   :  { %95 = vsyncpa [#allocation3], 1 }
  0x1f   :  { %96 = vsyncpa [#allocation6], 1 }
  0x20   :  { %97 = vsyncpa [#allocation4], 1 }
  0x21   :  { %98 = vsyncpa [#allocation9], 1 }

</bundles_post_ra>
